<compile_context>
chip_gen: v7x
topology: tpu7x:2x2x1
jax: 0.10.0
libtpu: 0.0.40
codegen_flags: <defaults>
</compile_context>

<pallas_src>
import functools

import jax
import jax.numpy as jnp
from jax import lax
from jax.experimental import pallas as pl
from jax.experimental.pallas import tpu as pltpu


O_PAD = 128  # lane-dense padded output width (wrapper slices back to O)


# ----------------------------- Pallas kernel ------------------------------- #
def _lstm_head_kernel(
    x_ref,        # (T*B, F)    time-major flattened input
    wx_ref,       # (F, 8H)     input projection weight, packed gate layout (layer-1 cols = 0)
    bproj_ref,    # (1, 8H)     packed bias [b0 gates interleaved with b1 gates]
    wf_ref,       # (2H, 8H)    skewed fused recurrent weight [[whh0, wih1],[0, whh1]] (permuted cols)
    w1_ref,       # (2H, 4H)    epilogue layer-1 weight concat([wih1, whh1]) (original i,f,g,o order)
    b1_ref,       # (1, 4H)     layer-1 bias
    wlin_ref,     # (H, O_PAD)  final Linear weight with LayerNorm gamma folded in, zero-padded
    blin_ref,     # (1, O_PAD)  final Linear bias with LayerNorm beta folded in, zero-padded
    out_ref,      # (B, O_PAD)  padded output
):
    TB, _ = x_ref.shape
    H = wlin_ref.shape[0]
    B = out_ref.shape[0]
    T = TB // B
    H2, H4, H8 = 2 * H, 4 * H, 8 * H

    wf = wf_ref[...]

    # Prologue (off the serial chain): hoisted input projection for ALL steps in the
    # packed/permuted gate layout, both biases folded in.
    # addend[t*B:(t+1)*B, :] is the full additive gate term for iteration t.
    addend = (jnp.dot(x_ref[...], wx_ref[...], preferred_element_type=jnp.float32)
              + bproj_ref[...])                                           # (T*B, 8H)

    def packed_cell(gates, c_pk):
        # gates layout: [i0 i1 | f0 f1 | g0 g1 | o0 o1], each block H lanes wide.
        # One sigmoid over the contiguous i|f half, one over o, one tanh over g:
        # no wasted EUP work, and the packed [h0|h1] / [c0|c1] state is produced
        # directly (no per-step concatenation).
        sif = jax.nn.sigmoid(gates[:, 0:H4])
        i_pk = sif[:, 0:H2]
        f_pk = sif[:, H2:H4]
        g_pk = jnp.tanh(gates[:, H4:H4 + H2])
        o_pk = jax.nn.sigmoid(gates[:, H4 + H2:H8])
        c_new = f_pk * c_pk + i_pk * g_pk
        h_new = o_pk * jnp.tanh(c_new)
        return h_new, c_new

    # --- iteration 0: layer-0 step 0 only.  All initial states are zero, so there is
    # no recurrent matmul and no forget-gate term.
    a0 = addend[0:B, :]
    c0_0 = jax.nn.sigmoid(a0[:, 0:H]) * jnp.tanh(a0[:, H4:H4 + H])          # i0 * g0
    h0_0 = jax.nn.sigmoid(a0[:, H4 + H2:H4 + H2 + H]) * jnp.tanh(c0_0)      # o0 * tanh(c0)
    zH = jnp.zeros((B, H), dtype=jnp.float32)
    c_pk = jnp.concatenate([c0_0, zH], axis=-1)          # [c0(0) | c1(-1)=0]

    # --- iteration 1: layer-0 step 1 + layer-1 step 0.  h1(-1) = 0, so only the top
    # (h0) half of the fused weight is needed: a (B,H)x(H,8H) matmul.
    gates = (jnp.dot(h0_0, wf[0:H, :], preferred_element_type=jnp.float32)
             + addend[B:2 * B, :])
    h_pk, c_pk = packed_cell(gates, c_pk)

    # --- iterations 2..T-1 (fully unrolled): one fused (B,2H)x(2H,8H) matmul per step
    # computes layer-0 step t and layer-1 step t-1 simultaneously (layer skewing).
    # The previous iteration's packed h state [h0(t-1)|h1(t-2)] is exactly the LHS.
    for t in range(2, T):
        gates = (jnp.dot(h_pk, wf, preferred_element_type=jnp.float32)
                 + addend[t * B:(t + 1) * B, :])
        h_pk, c_pk = packed_cell(gates, c_pk)

    # --- epilogue: finish layer-1 step T-1 (un-fused, original i,f,g,o gate order).
    # TODO(synk): inter-layer LSTM dropout is identity in eval mode (implemented as such).
    g1 = jnp.dot(h_pk, w1_ref[...], preferred_element_type=jnp.float32) + b1_ref[...]
    i1 = jax.nn.sigmoid(g1[:, 0:H])
    f1 = jax.nn.sigmoid(g1[:, H:2 * H])
    gg = jnp.tanh(g1[:, 2 * H:3 * H])
    o1 = jax.nn.sigmoid(g1[:, 3 * H:4 * H])
    c1 = f1 * c_pk[:, H:H2] + i1 * gg
    h1 = o1 * jnp.tanh(c1)

    # LayerNorm statistics only (eps = 1e-5); the affine (gamma, beta) is folded into
    # the final Linear at init.  Dropout in eval mode == identity.
    mu = jnp.mean(h1, axis=-1, keepdims=True)
    xc = h1 - mu
    var = jnp.mean(xc * xc, axis=-1, keepdims=True)
    y = xc * lax.rsqrt(var + 1e-5)

    # Lane-dense (padded) final store.
    out = jnp.dot(y, wlin_ref[...], preferred_element_type=jnp.float32) + blin_ref[...]
    out_ref[...] = out.astype(out_ref.dtype)


# ------------------- One-time parameter fusion (NOT per-call) ---------------- #
def prepare_params(params):
    """Fuse/permute/pad module parameters into kernel-ready arrays.  Run once."""
    H = params["whh0"].shape[0]
    F = params["wih0"].shape[0]
    O = params["wlin"].shape[1]

    def interleave(a0, a1):
        # (.., 4H) [i f g o] x2  ->  (.., 8H) [i0 i1 f0 f1 g0 g1 o0 o1]
        parts = []
        for k in range(4):
            parts.append(a0[..., k * H:(k + 1) * H])
            parts.append(a1[..., k * H:(k + 1) * H])
        return jnp.concatenate(parts, axis=-1)

    z4h_H = jnp.zeros((H, 4 * H), jnp.float32)
    z4h_F = jnp.zeros((F, 4 * H), jnp.float32)

    # Skewed fused recurrent weight: rows 0:H multiply h0(t-1), rows H:2H multiply h1(t-2).
    wf = jnp.concatenate(
        [interleave(params["whh0"], params["wih1"]),
         interleave(z4h_H, params["whh1"])], axis=0)                    # (2H, 8H)

    # Hoisted input projection (layer-1 columns zero) + packed bias (b0 and b1 folded in).
    wx = interleave(params["wih0"], z4h_F)                              # (F, 8H)
    bproj = interleave(params["b0"], params["b1"])                      # (1, 8H)

    # Epilogue layer-1 weight, original gate order.
    w1 = jnp.concatenate([params["wih1"], params["whh1"]], axis=0)      # (2H, 4H)

    # LayerNorm affine folded into the final Linear, padded to lane-dense width.
    wlin_f = params["ln_gamma"].reshape(H, 1) * params["wlin"]          # (H, O)
    blin_f = params["ln_beta"] @ params["wlin"] + params["blin"]        # (1, O)
    wlin_p = jnp.pad(wlin_f, ((0, 0), (0, O_PAD - O)))                  # (H, O_PAD)
    blin_p = jnp.pad(blin_f, ((0, 0), (0, O_PAD - O)))                  # (1, O_PAD)

    return {"wx": wx, "bproj": bproj, "wf": wf, "w1": w1, "b1": params["b1"],
            "wlin": wlin_p, "blin": blin_p}


# ------------------------------- Wrapper ------------------------------------ #
@functools.partial(jax.jit, static_argnames=("out_dim",))
def lstm_model_forward(x, kp, *, out_dim):
    """x: (B, T, F) float32 (batch_first, like the PyTorch module).  Requires T >= 2."""
    B, T, F = x.shape
    # Time-major, flattened input so per-step kernel slices are contiguous sublanes.
    x_tm = x.swapaxes(0, 1).reshape(T * B, F)

    vmem = pl.BlockSpec(memory_space=pltpu.MemorySpace.VMEM)
    out = pl.pallas_call(
        _lstm_head_kernel,
        out_shape=jax.ShapeDtypeStruct((B, O_PAD), jnp.float32),
        in_specs=[vmem] * 8,
        out_specs=vmem,
    )(x_tm, kp["wx"], kp["bproj"], kp["wf"], kp["w1"], kp["b1"],
      kp["wlin"], kp["blin"])
    return out[:, :out_dim]


# ------------------------- Parameter initialization ------------------------- #
def init_params(key, input_size, hidden_size, output_steps):
    """Deterministic init mirroring LSTMModel._init_weights shapes/intent."""
    H = hidden_size
    ks = jax.random.split(key, 8)

    def kaiming(k, shape):
        fan_in = shape[0]
        return jax.random.normal(k, shape, jnp.float32) * jnp.sqrt(2.0 / fan_in)

    def orthogonal(k, shape):
        a = jax.random.normal(k, shape, jnp.float32)
        q, r = jnp.linalg.qr(a)
        return q * jnp.sign(jnp.diag(r))[None, :]

    def xavier(k, shape):
        fan_in, fan_out = shape
        return jax.random.normal(k, shape, jnp.float32) * jnp.sqrt(2.0 / (fan_in + fan_out))

    params = {
        # weights stored pre-transposed: (in_features, 4H), PyTorch gate order i,f,g,o
        "wih0": kaiming(ks[0], (input_size, 4 * H)),
        "whh0": jnp.concatenate(
            [orthogonal(ks[1], (H, H)) for _ in range(4)], axis=1),  # (H, 4H)
        "b0": jnp.zeros((1, 4 * H), jnp.float32),                    # b_ih + b_hh = 0
        "wih1": kaiming(ks[2], (H, 4 * H)),
        "whh1": jnp.concatenate(
            [orthogonal(ks[3], (H, H)) for _ in range(4)], axis=1),
        "b1": jnp.zeros((1, 4 * H), jnp.float32),
        "ln_gamma": jnp.ones((1, H), jnp.float32),
        "ln_beta": jnp.zeros((1, H), jnp.float32),
        "wlin": xavier(ks[4], (H, output_steps)),                    # (H, O)
        "blin": (jax.random.uniform(ks[5], (1, output_steps), jnp.float32) - 0.5)
                * (2.0 / jnp.sqrt(H)),
    }
    return params


# ------------------------------ Reference ----------------------------------- #
def reference_forward(x, params):
    """Pure-JAX reference of the same forward pass (eval mode)."""
    B, T, F = x.shape
    H = params["whh0"].shape[0]

    def cell(x_t, h, c, wih, whh, b):
        g = x_t @ wih + h @ whh + b
        i = jax.nn.sigmoid(g[:, 0 * H:1 * H])
        f = jax.nn.sigmoid(g[:, 1 * H:2 * H])
        gg = jnp.tanh(g[:, 2 * H:3 * H])
        o = jax.nn.sigmoid(g[:, 3 * H:4 * H])
        c = f * c + i * gg
        h = o * jnp.tanh(c)
        return h, c

    h0 = c0 = h1 = c1 = jnp.zeros((B, H), jnp.float32)
    for t in range(T):
        h0, c0 = cell(x[:, t, :], h0, c0, params["wih0"], params["whh0"], params["b0"])
        h1, c1 = cell(h0, h1, c1, params["wih1"], params["whh1"], params["b1"])

    mu = jnp.mean(h1, axis=-1, keepdims=True)
    var = jnp.mean((h1 - mu) ** 2, axis=-1, keepdims=True)
    y = (h1 - mu) / jnp.sqrt(var + 1e-5) * params["ln_gamma"] + params["ln_beta"]
    return y @ params["wlin"] + params["blin"]


# --------------------------------- Main -------------------------------------- #
if __name__ == "__main__":
    INPUT_SIZE = 4
    HIDDEN_SIZE = 32
    OUTPUT_STEPS = 4
    SEQ_LEN = 8
    BATCH = 2

    key = jax.random.PRNGKey(0)
    kx, kp = jax.random.split(key)
    x = jax.random.normal(kx, (BATCH, SEQ_LEN, INPUT_SIZE), jnp.float32)
    params = init_params(kp, INPUT_SIZE, HIDDEN_SIZE, OUTPUT_STEPS)

    # One-time parameter fusion (kept out of the per-call jitted forward).
    kparams = prepare_params(params)

    out = lstm_model_forward(x, kparams, out_dim=OUTPUT_STEPS)
    out = jax.block_until_ready(out)

    ref = reference_forward(x, params)
    assert out.shape == (BATCH, OUTPUT_STEPS)
    assert jnp.allclose(out, ref, atol=1e-4, rtol=1e-4), "mismatch vs JAX reference"

    print("KERNEL_OK")
</pallas_src>

<mosaic_0001>
module attributes {stable_mosaic.version = 11 : i64} {
  func.func @_lstm_head_kernel(%arg0: memref<16x4xf32, #tpu.memory_space<vmem>>, %arg1: memref<4x256xf32, #tpu.memory_space<vmem>>, %arg2: memref<1x256xf32, #tpu.memory_space<vmem>>, %arg3: memref<64x256xf32, #tpu.memory_space<vmem>>, %arg4: memref<64x128xf32, #tpu.memory_space<vmem>>, %arg5: memref<1x128xf32, #tpu.memory_space<vmem>>, %arg6: memref<32x128xf32, #tpu.memory_space<vmem>>, %arg7: memref<1x128xf32, #tpu.memory_space<vmem>>, %arg8: memref<2x128xf32, #tpu.memory_space<vmem>>) attributes {dimension_semantics = [], scalar_prefetch = 0 : i64, scratch_operands = 0 : i64, tpu.core_type = #tpu.core_type<tc>} {
    %c0 = arith.constant 0 : index
    %c0_0 = arith.constant 0 : index
    %0 = vector.load %arg3[%c0, %c0_0] : memref<64x256xf32, #tpu.memory_space<vmem>>, vector<64x256xf32>
    %c0_1 = arith.constant 0 : index
    %c0_2 = arith.constant 0 : index
    %1 = vector.load %arg0[%c0_1, %c0_2] : memref<16x4xf32, #tpu.memory_space<vmem>>, vector<16x4xf32>
    %c0_3 = arith.constant 0 : index
    %c0_4 = arith.constant 0 : index
    %2 = vector.load %arg1[%c0_3, %c0_4] : memref<4x256xf32, #tpu.memory_space<vmem>>, vector<4x256xf32>
    %cst = arith.constant dense<0.000000e+00> : vector<16x256xf32>
    %3 = tpu.matmul %1, %2, %cst {dimension_numbers = #tpu.dot_dimension_numbers<[1], [0], [0], [1], [0, 0, 1, 1], [], []>} : vector<16x4xf32>, vector<4x256xf32>, vector<16x256xf32> -> vector<16x256xf32>
    %c0_5 = arith.constant 0 : index
    %c0_6 = arith.constant 0 : index
    %4 = vector.load %arg2[%c0_5, %c0_6] : memref<1x256xf32, #tpu.memory_space<vmem>>, vector<1x256xf32>
    %5 = vector.broadcast %4 : vector<1x256xf32> to vector<16x256xf32>
    %6 = arith.addf %3, %5 : vector<16x256xf32>
    %7 = vector.extract_strided_slice %6 {offsets = [0, 0], sizes = [2, 256], strides = [1, 1]} : vector<16x256xf32> to vector<2x256xf32>
    %8 = vector.extract_strided_slice %7 {offsets = [0, 0], sizes = [2, 32], strides = [1, 1]} : vector<2x256xf32> to vector<2x32xf32>
    %9 = arith.negf %8 : vector<2x32xf32>
    %10 = math.exp %9 : vector<2x32xf32>
    %cst_7 = arith.constant 1.000000e+00 : f32
    %11 = vector.broadcast %cst_7 : f32 to vector<2x32xf32>
    %12 = arith.addf %11, %10 : vector<2x32xf32>
    %13 = arith.divf %11, %12 : vector<2x32xf32>
    %14 = vector.extract_strided_slice %7 {offsets = [0, 128], sizes = [2, 32], strides = [1, 1]} : vector<2x256xf32> to vector<2x32xf32>
    %15 = math.tanh %14 : vector<2x32xf32>
    %16 = arith.mulf %13, %15 : vector<2x32xf32>
    %17 = vector.extract_strided_slice %7 {offsets = [0, 192], sizes = [2, 32], strides = [1, 1]} : vector<2x256xf32> to vector<2x32xf32>
    %18 = arith.negf %17 : vector<2x32xf32>
    %19 = math.exp %18 : vector<2x32xf32>
    %cst_8 = arith.constant 1.000000e+00 : f32
    %20 = vector.broadcast %cst_8 : f32 to vector<2x32xf32>
    %21 = arith.addf %20, %19 : vector<2x32xf32>
    %22 = arith.divf %20, %21 : vector<2x32xf32>
    %23 = math.tanh %16 : vector<2x32xf32>
    %24 = arith.mulf %22, %23 : vector<2x32xf32>
    %cst_9 = arith.constant 0.000000e+00 : f32
    %25 = vector.broadcast %cst_9 : f32 to vector<2x32xf32>
    %26 = tpu.concatenate %16, %25 in 1 : vector<2x32xf32>, vector<2x32xf32> -> vector<2x64xf32>
    %27 = vector.extract_strided_slice %0 {offsets = [0, 0], sizes = [32, 256], strides = [1, 1]} : vector<64x256xf32> to vector<32x256xf32>
    %cst_10 = arith.constant dense<0.000000e+00> : vector<2x256xf32>
    %28 = tpu.matmul %24, %27, %cst_10 {dimension_numbers = #tpu.dot_dimension_numbers<[1], [0], [0], [1], [0, 0, 1, 1], [], []>} : vector<2x32xf32>, vector<32x256xf32>, vector<2x256xf32> -> vector<2x256xf32>
    %29 = vector.extract_strided_slice %6 {offsets = [2, 0], sizes = [2, 256], strides = [1, 1]} : vector<16x256xf32> to vector<2x256xf32>
    %30 = arith.addf %28, %29 : vector<2x256xf32>
    %31 = vector.extract_strided_slice %30 {offsets = [0, 0], sizes = [2, 128], strides = [1, 1]} : vector<2x256xf32> to vector<2x128xf32>
    %32 = arith.negf %31 : vector<2x128xf32>
    %33 = math.exp %32 : vector<2x128xf32>
    %cst_11 = arith.constant 1.000000e+00 : f32
    %34 = vector.broadcast %cst_11 : f32 to vector<2x128xf32>
    %35 = arith.addf %34, %33 : vector<2x128xf32>
    %36 = arith.divf %34, %35 : vector<2x128xf32>
    %37 = vector.extract_strided_slice %36 {offsets = [0, 0], sizes = [2, 64], strides = [1, 1]} : vector<2x128xf32> to vector<2x64xf32>
    %38 = vector.extract_strided_slice %36 {offsets = [0, 64], sizes = [2, 64], strides = [1, 1]} : vector<2x128xf32> to vector<2x64xf32>
    %39 = vector.extract_strided_slice %30 {offsets = [0, 128], sizes = [2, 64], strides = [1, 1]} : vector<2x256xf32> to vector<2x64xf32>
    %40 = math.tanh %39 : vector<2x64xf32>
    %41 = vector.extract_strided_slice %30 {offsets = [0, 192], sizes = [2, 64], strides = [1, 1]} : vector<2x256xf32> to vector<2x64xf32>
    %42 = arith.negf %41 : vector<2x64xf32>
    %43 = math.exp %42 : vector<2x64xf32>
    %cst_12 = arith.constant 1.000000e+00 : f32
    %44 = vector.broadcast %cst_12 : f32 to vector<2x64xf32>
    %45 = arith.addf %44, %43 : vector<2x64xf32>
    %46 = arith.divf %44, %45 : vector<2x64xf32>
    %47 = arith.mulf %38, %26 : vector<2x64xf32>
    %48 = arith.mulf %37, %40 : vector<2x64xf32>
    %49 = arith.addf %47, %48 : vector<2x64xf32>
    %50 = math.tanh %49 : vector<2x64xf32>
    %51 = arith.mulf %46, %50 : vector<2x64xf32>
    %cst_13 = arith.constant dense<0.000000e+00> : vector<2x256xf32>
    %52 = tpu.matmul %51, %0, %cst_13 {dimension_numbers = #tpu.dot_dimension_numbers<[1], [0], [0], [1], [0, 0, 1, 1], [], []>} : vector<2x64xf32>, vector<64x256xf32>, vector<2x256xf32> -> vector<2x256xf32>
    %53 = vector.extract_strided_slice %6 {offsets = [4, 0], sizes = [2, 256], strides = [1, 1]} : vector<16x256xf32> to vector<2x256xf32>
    %54 = arith.addf %52, %53 : vector<2x256xf32>
    %55 = vector.extract_strided_slice %54 {offsets = [0, 0], sizes = [2, 128], strides = [1, 1]} : vector<2x256xf32> to vector<2x128xf32>
    %56 = arith.negf %55 : vector<2x128xf32>
    %57 = math.exp %56 : vector<2x128xf32>
    %cst_14 = arith.constant 1.000000e+00 : f32
    %58 = vector.broadcast %cst_14 : f32 to vector<2x128xf32>
    %59 = arith.addf %58, %57 : vector<2x128xf32>
    %60 = arith.divf %58, %59 : vector<2x128xf32>
    %61 = vector.extract_strided_slice %60 {offsets = [0, 0], sizes = [2, 64], strides = [1, 1]} : vector<2x128xf32> to vector<2x64xf32>
    %62 = vector.extract_strided_slice %60 {offsets = [0, 64], sizes = [2, 64], strides = [1, 1]} : vector<2x128xf32> to vector<2x64xf32>
    %63 = vector.extract_strided_slice %54 {offsets = [0, 128], sizes = [2, 64], strides = [1, 1]} : vector<2x256xf32> to vector<2x64xf32>
    %64 = math.tanh %63 : vector<2x64xf32>
    %65 = vector.extract_strided_slice %54 {offsets = [0, 192], sizes = [2, 64], strides = [1, 1]} : vector<2x256xf32> to vector<2x64xf32>
    %66 = arith.negf %65 : vector<2x64xf32>
    %67 = math.exp %66 : vector<2x64xf32>
    %cst_15 = arith.constant 1.000000e+00 : f32
    %68 = vector.broadcast %cst_15 : f32 to vector<2x64xf32>
    %69 = arith.addf %68, %67 : vector<2x64xf32>
    %70 = arith.divf %68, %69 : vector<2x64xf32>
    %71 = arith.mulf %62, %49 : vector<2x64xf32>
    %72 = arith.mulf %61, %64 : vector<2x64xf32>
    %73 = arith.addf %71, %72 : vector<2x64xf32>
    %74 = math.tanh %73 : vector<2x64xf32>
    %75 = arith.mulf %70, %74 : vector<2x64xf32>
    %cst_16 = arith.constant dense<0.000000e+00> : vector<2x256xf32>
    %76 = tpu.matmul %75, %0, %cst_16 {dimension_numbers = #tpu.dot_dimension_numbers<[1], [0], [0], [1], [0, 0, 1, 1], [], []>} : vector<2x64xf32>, vector<64x256xf32>, vector<2x256xf32> -> vector<2x256xf32>
    %77 = vector.extract_strided_slice %6 {offsets = [6, 0], sizes = [2, 256], strides = [1, 1]} : vector<16x256xf32> to vector<2x256xf32>
    %78 = arith.addf %76, %77 : vector<2x256xf32>
    %79 = vector.extract_strided_slice %78 {offsets = [0, 0], sizes = [2, 128], strides = [1, 1]} : vector<2x256xf32> to vector<2x128xf32>
    %80 = arith.negf %79 : vector<2x128xf32>
    %81 = math.exp %80 : vector<2x128xf32>
    %cst_17 = arith.constant 1.000000e+00 : f32
    %82 = vector.broadcast %cst_17 : f32 to vector<2x128xf32>
    %83 = arith.addf %82, %81 : vector<2x128xf32>
    %84 = arith.divf %82, %83 : vector<2x128xf32>
    %85 = vector.extract_strided_slice %84 {offsets = [0, 0], sizes = [2, 64], strides = [1, 1]} : vector<2x128xf32> to vector<2x64xf32>
    %86 = vector.extract_strided_slice %84 {offsets = [0, 64], sizes = [2, 64], strides = [1, 1]} : vector<2x128xf32> to vector<2x64xf32>
    %87 = vector.extract_strided_slice %78 {offsets = [0, 128], sizes = [2, 64], strides = [1, 1]} : vector<2x256xf32> to vector<2x64xf32>
    %88 = math.tanh %87 : vector<2x64xf32>
    %89 = vector.extract_strided_slice %78 {offsets = [0, 192], sizes = [2, 64], strides = [1, 1]} : vector<2x256xf32> to vector<2x64xf32>
    %90 = arith.negf %89 : vector<2x64xf32>
    %91 = math.exp %90 : vector<2x64xf32>
    %cst_18 = arith.constant 1.000000e+00 : f32
    %92 = vector.broadcast %cst_18 : f32 to vector<2x64xf32>
    %93 = arith.addf %92, %91 : vector<2x64xf32>
    %94 = arith.divf %92, %93 : vector<2x64xf32>
    %95 = arith.mulf %86, %73 : vector<2x64xf32>
    %96 = arith.mulf %85, %88 : vector<2x64xf32>
    %97 = arith.addf %95, %96 : vector<2x64xf32>
    %98 = math.tanh %97 : vector<2x64xf32>
    %99 = arith.mulf %94, %98 : vector<2x64xf32>
    %cst_19 = arith.constant dense<0.000000e+00> : vector<2x256xf32>
    %100 = tpu.matmul %99, %0, %cst_19 {dimension_numbers = #tpu.dot_dimension_numbers<[1], [0], [0], [1], [0, 0, 1, 1], [], []>} : vector<2x64xf32>, vector<64x256xf32>, vector<2x256xf32> -> vector<2x256xf32>
    %101 = vector.extract_strided_slice %6 {offsets = [8, 0], sizes = [2, 256], strides = [1, 1]} : vector<16x256xf32> to vector<2x256xf32>
    %102 = arith.addf %100, %101 : vector<2x256xf32>
    %103 = vector.extract_strided_slice %102 {offsets = [0, 0], sizes = [2, 128], strides = [1, 1]} : vector<2x256xf32> to vector<2x128xf32>
    %104 = arith.negf %103 : vector<2x128xf32>
    %105 = math.exp %104 : vector<2x128xf32>
    %cst_20 = arith.constant 1.000000e+00 : f32
    %106 = vector.broadcast %cst_20 : f32 to vector<2x128xf32>
    %107 = arith.addf %106, %105 : vector<2x128xf32>
    %108 = arith.divf %106, %107 : vector<2x128xf32>
    %109 = vector.extract_strided_slice %108 {offsets = [0, 0], sizes = [2, 64], strides = [1, 1]} : vector<2x128xf32> to vector<2x64xf32>
    %110 = vector.extract_strided_slice %108 {offsets = [0, 64], sizes = [2, 64], strides = [1, 1]} : vector<2x128xf32> to vector<2x64xf32>
    %111 = vector.extract_strided_slice %102 {offsets = [0, 128], sizes = [2, 64], strides = [1, 1]} : vector<2x256xf32> to vector<2x64xf32>
    %112 = math.tanh %111 : vector<2x64xf32>
    %113 = vector.extract_strided_slice %102 {offsets = [0, 192], sizes = [2, 64], strides = [1, 1]} : vector<2x256xf32> to vector<2x64xf32>
    %114 = arith.negf %113 : vector<2x64xf32>
    %115 = math.exp %114 : vector<2x64xf32>
    %cst_21 = arith.constant 1.000000e+00 : f32
    %116 = vector.broadcast %cst_21 : f32 to vector<2x64xf32>
    %117 = arith.addf %116, %115 : vector<2x64xf32>
    %118 = arith.divf %116, %117 : vector<2x64xf32>
    %119 = arith.mulf %110, %97 : vector<2x64xf32>
    %120 = arith.mulf %109, %112 : vector<2x64xf32>
    %121 = arith.addf %119, %120 : vector<2x64xf32>
    %122 = math.tanh %121 : vector<2x64xf32>
    %123 = arith.mulf %118, %122 : vector<2x64xf32>
    %cst_22 = arith.constant dense<0.000000e+00> : vector<2x256xf32>
    %124 = tpu.matmul %123, %0, %cst_22 {dimension_numbers = #tpu.dot_dimension_numbers<[1], [0], [0], [1], [0, 0, 1, 1], [], []>} : vector<2x64xf32>, vector<64x256xf32>, vector<2x256xf32> -> vector<2x256xf32>
    %125 = vector.extract_strided_slice %6 {offsets = [10, 0], sizes = [2, 256], strides = [1, 1]} : vector<16x256xf32> to vector<2x256xf32>
    %126 = arith.addf %124, %125 : vector<2x256xf32>
    %127 = vector.extract_strided_slice %126 {offsets = [0, 0], sizes = [2, 128], strides = [1, 1]} : vector<2x256xf32> to vector<2x128xf32>
    %128 = arith.negf %127 : vector<2x128xf32>
    %129 = math.exp %128 : vector<2x128xf32>
    %cst_23 = arith.constant 1.000000e+00 : f32
    %130 = vector.broadcast %cst_23 : f32 to vector<2x128xf32>
    %131 = arith.addf %130, %129 : vector<2x128xf32>
    %132 = arith.divf %130, %131 : vector<2x128xf32>
    %133 = vector.extract_strided_slice %132 {offsets = [0, 0], sizes = [2, 64], strides = [1, 1]} : vector<2x128xf32> to vector<2x64xf32>
    %134 = vector.extract_strided_slice %132 {offsets = [0, 64], sizes = [2, 64], strides = [1, 1]} : vector<2x128xf32> to vector<2x64xf32>
    %135 = vector.extract_strided_slice %126 {offsets = [0, 128], sizes = [2, 64], strides = [1, 1]} : vector<2x256xf32> to vector<2x64xf32>
    %136 = math.tanh %135 : vector<2x64xf32>
    %137 = vector.extract_strided_slice %126 {offsets = [0, 192], sizes = [2, 64], strides = [1, 1]} : vector<2x256xf32> to vector<2x64xf32>
    %138 = arith.negf %137 : vector<2x64xf32>
    %139 = math.exp %138 : vector<2x64xf32>
    %cst_24 = arith.constant 1.000000e+00 : f32
    %140 = vector.broadcast %cst_24 : f32 to vector<2x64xf32>
    %141 = arith.addf %140, %139 : vector<2x64xf32>
    %142 = arith.divf %140, %141 : vector<2x64xf32>
    %143 = arith.mulf %134, %121 : vector<2x64xf32>
    %144 = arith.mulf %133, %136 : vector<2x64xf32>
    %145 = arith.addf %143, %144 : vector<2x64xf32>
    %146 = math.tanh %145 : vector<2x64xf32>
    %147 = arith.mulf %142, %146 : vector<2x64xf32>
    %cst_25 = arith.constant dense<0.000000e+00> : vector<2x256xf32>
    %148 = tpu.matmul %147, %0, %cst_25 {dimension_numbers = #tpu.dot_dimension_numbers<[1], [0], [0], [1], [0, 0, 1, 1], [], []>} : vector<2x64xf32>, vector<64x256xf32>, vector<2x256xf32> -> vector<2x256xf32>
    %149 = vector.extract_strided_slice %6 {offsets = [12, 0], sizes = [2, 256], strides = [1, 1]} : vector<16x256xf32> to vector<2x256xf32>
    %150 = arith.addf %148, %149 : vector<2x256xf32>
    %151 = vector.extract_strided_slice %150 {offsets = [0, 0], sizes = [2, 128], strides = [1, 1]} : vector<2x256xf32> to vector<2x128xf32>
    %152 = arith.negf %151 : vector<2x128xf32>
    %153 = math.exp %152 : vector<2x128xf32>
    %cst_26 = arith.constant 1.000000e+00 : f32
    %154 = vector.broadcast %cst_26 : f32 to vector<2x128xf32>
    %155 = arith.addf %154, %153 : vector<2x128xf32>
    %156 = arith.divf %154, %155 : vector<2x128xf32>
    %157 = vector.extract_strided_slice %156 {offsets = [0, 0], sizes = [2, 64], strides = [1, 1]} : vector<2x128xf32> to vector<2x64xf32>
    %158 = vector.extract_strided_slice %156 {offsets = [0, 64], sizes = [2, 64], strides = [1, 1]} : vector<2x128xf32> to vector<2x64xf32>
    %159 = vector.extract_strided_slice %150 {offsets = [0, 128], sizes = [2, 64], strides = [1, 1]} : vector<2x256xf32> to vector<2x64xf32>
    %160 = math.tanh %159 : vector<2x64xf32>
    %161 = vector.extract_strided_slice %150 {offsets = [0, 192], sizes = [2, 64], strides = [1, 1]} : vector<2x256xf32> to vector<2x64xf32>
    %162 = arith.negf %161 : vector<2x64xf32>
    %163 = math.exp %162 : vector<2x64xf32>
    %cst_27 = arith.constant 1.000000e+00 : f32
    %164 = vector.broadcast %cst_27 : f32 to vector<2x64xf32>
    %165 = arith.addf %164, %163 : vector<2x64xf32>
    %166 = arith.divf %164, %165 : vector<2x64xf32>
    %167 = arith.mulf %158, %145 : vector<2x64xf32>
    %168 = arith.mulf %157, %160 : vector<2x64xf32>
    %169 = arith.addf %167, %168 : vector<2x64xf32>
    %170 = math.tanh %169 : vector<2x64xf32>
    %171 = arith.mulf %166, %170 : vector<2x64xf32>
    %cst_28 = arith.constant dense<0.000000e+00> : vector<2x256xf32>
    %172 = tpu.matmul %171, %0, %cst_28 {dimension_numbers = #tpu.dot_dimension_numbers<[1], [0], [0], [1], [0, 0, 1, 1], [], []>} : vector<2x64xf32>, vector<64x256xf32>, vector<2x256xf32> -> vector<2x256xf32>
    %173 = vector.extract_strided_slice %6 {offsets = [14, 0], sizes = [2, 256], strides = [1, 1]} : vector<16x256xf32> to vector<2x256xf32>
    %174 = arith.addf %172, %173 : vector<2x256xf32>
    %175 = vector.extract_strided_slice %174 {offsets = [0, 0], sizes = [2, 128], strides = [1, 1]} : vector<2x256xf32> to vector<2x128xf32>
    %176 = arith.negf %175 : vector<2x128xf32>
    %177 = math.exp %176 : vector<2x128xf32>
    %cst_29 = arith.constant 1.000000e+00 : f32
    %178 = vector.broadcast %cst_29 : f32 to vector<2x128xf32>
    %179 = arith.addf %178, %177 : vector<2x128xf32>
    %180 = arith.divf %178, %179 : vector<2x128xf32>
    %181 = vector.extract_strided_slice %180 {offsets = [0, 0], sizes = [2, 64], strides = [1, 1]} : vector<2x128xf32> to vector<2x64xf32>
    %182 = vector.extract_strided_slice %180 {offsets = [0, 64], sizes = [2, 64], strides = [1, 1]} : vector<2x128xf32> to vector<2x64xf32>
    %183 = vector.extract_strided_slice %174 {offsets = [0, 128], sizes = [2, 64], strides = [1, 1]} : vector<2x256xf32> to vector<2x64xf32>
    %184 = math.tanh %183 : vector<2x64xf32>
    %185 = vector.extract_strided_slice %174 {offsets = [0, 192], sizes = [2, 64], strides = [1, 1]} : vector<2x256xf32> to vector<2x64xf32>
    %186 = arith.negf %185 : vector<2x64xf32>
    %187 = math.exp %186 : vector<2x64xf32>
    %cst_30 = arith.constant 1.000000e+00 : f32
    %188 = vector.broadcast %cst_30 : f32 to vector<2x64xf32>
    %189 = arith.addf %188, %187 : vector<2x64xf32>
    %190 = arith.divf %188, %189 : vector<2x64xf32>
    %191 = arith.mulf %182, %169 : vector<2x64xf32>
    %192 = arith.mulf %181, %184 : vector<2x64xf32>
    %193 = arith.addf %191, %192 : vector<2x64xf32>
    %194 = math.tanh %193 : vector<2x64xf32>
    %195 = arith.mulf %190, %194 : vector<2x64xf32>
    %c0_31 = arith.constant 0 : index
    %c0_32 = arith.constant 0 : index
    %196 = vector.load %arg4[%c0_31, %c0_32] : memref<64x128xf32, #tpu.memory_space<vmem>>, vector<64x128xf32>
    %cst_33 = arith.constant dense<0.000000e+00> : vector<2x128xf32>
    %197 = tpu.matmul %195, %196, %cst_33 {dimension_numbers = #tpu.dot_dimension_numbers<[1], [0], [0], [1], [0, 0, 1, 1], [], []>} : vector<2x64xf32>, vector<64x128xf32>, vector<2x128xf32> -> vector<2x128xf32>
    %c0_34 = arith.constant 0 : index
    %c0_35 = arith.constant 0 : index
    %198 = vector.load %arg5[%c0_34, %c0_35] : memref<1x128xf32, #tpu.memory_space<vmem>>, vector<1x128xf32>
    %199 = vector.broadcast %198 : vector<1x128xf32> to vector<2x128xf32>
    %200 = arith.addf %197, %199 : vector<2x128xf32>
    %201 = vector.extract_strided_slice %200 {offsets = [0, 0], sizes = [2, 32], strides = [1, 1]} : vector<2x128xf32> to vector<2x32xf32>
    %202 = arith.negf %201 : vector<2x32xf32>
    %203 = math.exp %202 : vector<2x32xf32>
    %cst_36 = arith.constant 1.000000e+00 : f32
    %204 = vector.broadcast %cst_36 : f32 to vector<2x32xf32>
    %205 = arith.addf %204, %203 : vector<2x32xf32>
    %206 = arith.divf %204, %205 : vector<2x32xf32>
    %207 = vector.extract_strided_slice %200 {offsets = [0, 32], sizes = [2, 32], strides = [1, 1]} : vector<2x128xf32> to vector<2x32xf32>
    %208 = arith.negf %207 : vector<2x32xf32>
    %209 = math.exp %208 : vector<2x32xf32>
    %cst_37 = arith.constant 1.000000e+00 : f32
    %210 = vector.broadcast %cst_37 : f32 to vector<2x32xf32>
    %211 = arith.addf %210, %209 : vector<2x32xf32>
    %212 = arith.divf %210, %211 : vector<2x32xf32>
    %213 = vector.extract_strided_slice %200 {offsets = [0, 64], sizes = [2, 32], strides = [1, 1]} : vector<2x128xf32> to vector<2x32xf32>
    %214 = math.tanh %213 : vector<2x32xf32>
    %215 = vector.extract_strided_slice %200 {offsets = [0, 96], sizes = [2, 32], strides = [1, 1]} : vector<2x128xf32> to vector<2x32xf32>
    %216 = arith.negf %215 : vector<2x32xf32>
    %217 = math.exp %216 : vector<2x32xf32>
    %cst_38 = arith.constant 1.000000e+00 : f32
    %218 = vector.broadcast %cst_38 : f32 to vector<2x32xf32>
    %219 = arith.addf %218, %217 : vector<2x32xf32>
    %220 = arith.divf %218, %219 : vector<2x32xf32>
    %221 = vector.extract_strided_slice %193 {offsets = [0, 32], sizes = [2, 32], strides = [1, 1]} : vector<2x64xf32> to vector<2x32xf32>
    %222 = arith.mulf %212, %221 : vector<2x32xf32>
    %223 = arith.mulf %206, %214 : vector<2x32xf32>
    %224 = arith.addf %222, %223 : vector<2x32xf32>
    %225 = math.tanh %224 : vector<2x32xf32>
    %226 = arith.mulf %220, %225 : vector<2x32xf32>
    %cst_39 = arith.constant dense<0.000000e+00> : vector<2xf32>
    %227 = vector.multi_reduction <add>, %226, %cst_39 [1] : vector<2x32xf32> to vector<2xf32>
    %228 = vector.shape_cast %227 : vector<2xf32> to vector<2x1xf32>
    %cst_40 = arith.constant 3.200000e+01 : f32
    %229 = vector.broadcast %cst_40 : f32 to vector<2x1xf32>
    %230 = arith.divf %228, %229 : vector<2x1xf32>
    %231 = vector.broadcast %230 : vector<2x1xf32> to vector<2x32xf32>
    %232 = arith.subf %226, %231 : vector<2x32xf32>
    %233 = arith.mulf %232, %232 : vector<2x32xf32>
    %cst_41 = arith.constant dense<0.000000e+00> : vector<2xf32>
    %234 = vector.multi_reduction <add>, %233, %cst_41 [1] : vector<2x32xf32> to vector<2xf32>
    %235 = vector.shape_cast %234 : vector<2xf32> to vector<2x1xf32>
    %cst_42 = arith.constant 3.200000e+01 : f32
    %236 = vector.broadcast %cst_42 : f32 to vector<2x1xf32>
    %237 = arith.divf %235, %236 : vector<2x1xf32>
    %cst_43 = arith.constant 9.99999974E-6 : f32
    %238 = vector.broadcast %cst_43 : f32 to vector<2x1xf32>
    %239 = arith.addf %237, %238 : vector<2x1xf32>
    %240 = math.rsqrt %239 : vector<2x1xf32>
    %241 = vector.broadcast %240 : vector<2x1xf32> to vector<2x32xf32>
    %242 = arith.mulf %232, %241 : vector<2x32xf32>
    %c0_44 = arith.constant 0 : index
    %c0_45 = arith.constant 0 : index
    %243 = vector.load %arg6[%c0_44, %c0_45] : memref<32x128xf32, #tpu.memory_space<vmem>>, vector<32x128xf32>
    %cst_46 = arith.constant dense<0.000000e+00> : vector<2x128xf32>
    %244 = tpu.matmul %242, %243, %cst_46 {dimension_numbers = #tpu.dot_dimension_numbers<[1], [0], [0], [1], [0, 0, 1, 1], [], []>} : vector<2x32xf32>, vector<32x128xf32>, vector<2x128xf32> -> vector<2x128xf32>
    %c0_47 = arith.constant 0 : index
    %c0_48 = arith.constant 0 : index
    %245 = vector.load %arg7[%c0_47, %c0_48] : memref<1x128xf32, #tpu.memory_space<vmem>>, vector<1x128xf32>
    %246 = vector.broadcast %245 : vector<1x128xf32> to vector<2x128xf32>
    %247 = arith.addf %244, %246 : vector<2x128xf32>
    %c0_49 = arith.constant 0 : index
    %c0_50 = arith.constant 0 : index
    %248 = vector.load %arg8[%c0_49, %c0_50] : memref<2x128xf32, #tpu.memory_space<vmem>>, vector<2x128xf32>
    tpu.vector_store %arg8[%c0_49, %c0_50], %247 {strides = array<i32>} : memref<2x128xf32, #tpu.memory_space<vmem>>, vector<2x128xf32>,
    return
  }
}

</mosaic_0001>

<bundles_post_ra>
// kernel: lstm_model_forward.1
= control target key start
LH: loop header
LB: loop body
LE: loop exit
PB: predicated region body
PF: predicated region fallthrough
CT: control target
= control target key end

     0   :  { %13 = vsyncpa [#allocation3], 0  ;;  %s1837_s0 = inlined_call_operand.vmem [shape: f32[16,4], index: 0, kind: input, shape index: {}]   ;;  %s1838_s1 = inlined_call_operand.vmem [shape: f32[4,256], index: 1, kind: input, shape index: {}]   ;;  %s1839_s2 = inlined_call_operand.vmem [shape: f32[1,256], index: 2, kind: input, shape index: {}]   ;;  %s1840_s3 = inlined_call_operand.hbm [shape: f32[64,256], index: 3, kind: input, shape index: {}]   ;;  %s1841_s4 = inlined_call_operand.hbm [shape: f32[64,128], index: 4, kind: input, shape index: {}]   ;;  %s1842_s5 = inlined_call_operand.vmem [shape: f32[1,128], index: 5, kind: input, shape index: {}]   ;;  %s1843_s6 = inlined_call_operand.vmem [shape: f32[32,128], index: 6, kind: input, shape index: {}]   ;;  %s1844_s7 = inlined_call_operand.vmem [shape: f32[1,128], index: 7, kind: input, shape index: {}]   ;;  %s1845_s8 = inlined_call_operand.hbm [shape: f32[2,128], index: 8, kind: output, shape index: {}]  }
   0x1   :  { %14 = vsyncpa [#allocation6], 0 }
   0x2   :  { %15 = vsyncpa [#allocation4], 0  ;;  %s1554_s27 = smov [#allocation2]   ;;  %s1482_s9 = scalar_lea.hbm %s1840_s3, 2048 }
   0x3   :  { %s27_s28 = sshll.u32 %s1554_s27, 4  ;;  %p1483_p0 = scmp.ne.s32.totalorder %s1840_s3, %s1482_s9  ;;  %s28_s28 = int_to_ptr.vmem [resolvable:$true] %s27_s28 }
   0x4   :  { %p1486_p1 = scmp.lt.u32.totalorder %s1482_s9, %s1840_s3 }
   0x6   :  { %p1488_p2 = pnand %p1486_p1, %p1483_p0 }
   0x8   :  { %1491 = shalt.err (!%p1488_p2)
}
   0x9   :  { %s1492_s14 = scalar_lea.vmem %s28_s28, 2048  ;;  %p1497_p4 = scmp.lt.s32.totalorder %s28_s28, %s28_s28 }
   0xa   :  { %p1493_p3 = scmp.ne.s32.totalorder %s28_s28, %s1492_s14  ;;  %p1498_p5 = scmp.lt.s32.totalorder %s1492_s14, %s1492_s14 }
   0xc   :  { %p1499_p6 = por %p1498_p5, %p1497_p4 }
   0xe   :  { %p1500_p7 = pnand %p1499_p6, %p1493_p3 }
  0x10   :  { %1503 = shalt.err (!%p1500_p7)
}
  0x11   :  { %s1555_s15 = smov 256   ;;  %s1556_s16 = smov 16  }
  0x12   :  { %33 = dma.hbm_to_vmem [thread:$0]  %s1840_s3, 2048, %s28_s28, [#allocation3], %s1555_s15, %s1555_s15, %s1556_s16  }
  0x13   :  { %s1557_s19 = smov [#allocation5]   ;;  %s1504_s23 = scalar_lea.hbm %s1841_s4, 1024 }
  0x14   :  { %s39_s20 = sshll.u32 %s1557_s19, 4  ;;  %p1505_p8 = scmp.ne.s32.totalorder %s1841_s4, %s1504_s23  ;;  %s40_s20 = int_to_ptr.vmem [resolvable:$true] %s39_s20 }
  0x15   :  { %p1508_p9 = scmp.lt.u32.totalorder %s1504_s23, %s1841_s4 }
  0x17   :  { %p1510_p10 = pnand %p1508_p9, %p1505_p8 }
  0x19   :  { %1513 = shalt.err (!%p1510_p10)
}
  0x1a   :  { %s1514_s29 = scalar_lea.vmem %s40_s20, 1024  ;;  %p1519_p12 = scmp.lt.s32.totalorder %s40_s20, %s40_s20 }
  0x1b   :  { %p1515_p11 = scmp.ne.s32.totalorder %s40_s20, %s1514_s29  ;;  %p1520_p13 = scmp.lt.s32.totalorder %s1514_s29, %s1514_s29 }
  0x1d   :  { %p1521_p0 = por %p1520_p13, %p1519_p12 }
  0x1f   :  { %p1522_p1 = pnand %p1521_p0, %p1515_p11 }
  0x21   :  { %1525 = shalt.err (!%p1522_p1)
}
  0x22   :  { %s1558_s3 = smov 128   ;;  %s1559_s28 = smov 8  }
  0x23   :  { %45 = dma.hbm_to_vmem [thread:$0]  %s1841_s4, 1024, %s40_s20, [#allocation6], %s1558_s3, %s1558_s3, %s1559_s28  }
  0x24   :  { %1548 = dma.done.wait [#allocation3], 2048  }
  0x25   :  { %1549 = vsyncadd [#allocation3], 4294965248 }
  0x26   :  { %1550 = dma.done.wait [#allocation6], 1024  }
  0x27   :  { %1551 = vsyncadd [#allocation6], 4294966272  ;;  %v1560_v0 = vmov 0.0   ;;  %v76_v1 = vld [vmem:[%s1838_s1] sm:$0xff]  ;;  %vm98_vm0 = vcmask 1043456   ;;  %vm91_vm1 = vcmask 31744   ;;  %v79_v4 = vlaneseq }
  0x28   :  { %167 = vmatprep.mubr.f32.mxu0 %v1560_v0  ;;  %277 = vmatprep.mubr.f32.mxu1 %v1560_v0  ;;  %v90_v2 = vcombine.high %v76_v1, %v76_v1  ;;  %v74_v3 = vld [vmem:[%s1837_s0] sm:$0xff]  ;;  %vm200_vm2 = vcmask 261120   ;;  %v59_v22 = vld [vmem:[#allocation2 + $0x8] sm:$0xff]  ;;  %v61_v23 = vld [vmem:[#allocation2 + $0x18] sm:$0xff]  ;;  %s1561_s1 = smov 64   ;;  %vm317_vm3 = vcmask 523264  }
  0x29   :  { %v80_v5 = vshrl.u32 %v79_v4, 7  ;;  %v77_v7 = vld [vmem:[%s1839_s2] sm:$0x3]  ;;  %v1662_v25 = vpack.c.bf16 %v61_v23, %v59_v22  ;;  %v60_v26 = vld [vmem:[#allocation2 + $0x10] sm:$0xff]  ;;  %v63_v27 = vld [vmem:[#allocation2 + $0x28] sm:$0xff]  ;;  %vm1563_vm4 = vmmov 0  }
  0x2a   :  { %1165 = vmatprep.subr.msk.mxu0 %vm98_vm0, %v90_v2  ;;  %v58_v24 = vld [vmem:[#allocation2] sm:$0xff]  ;;  %v65_v28 = vld [vmem:[#allocation2 + $0x38] sm:$0xff]  ;;  %v64_v32 = vld [vmem:[#allocation2 + $0x30] sm:$0xff]  ;;  %s1564_s17 = smov 32   ;;  %vm1043_vm5 = vcmask 254976  }
  0x2b   :  { %1166 = vmatpush1.msk.msra.mxu0 %vm98_vm0, %v76_v1  ;;  %v81_v6 = vsub.s32 0, %v80_v5  ;;  %v85_v13 = vsub.s32 1, %v80_v5  ;;  %v1664_v29 = vpack.c.bf16 %v60_v26, %v58_v24  ;;  %v1666_v30 = vpack.c.bf16 %v65_v28, %v63_v27  ;;  %v62_v31 = vld [vmem:[#allocation2 + $0x20] sm:$0xff]  ;;  %1242 = vmatprep.subr.bf16.mxu1 %v1662_v25  ;;  %v67_v54 = vld [vmem:[#allocation2 + $0x48] sm:$0xff]  ;;  %v69_v55 = vld [vmem:[#allocation2 + $0x58] sm:$0xff] }
  0x2c   :  { %1167 = vmatmul.mubr.msk.f32.vlgmr.msra.gmra.mrb[0].mxu0 %vm91_vm1, %v74_v3  ;;  %1250 = vmatprep.subr.bf16.mxu0 %v1662_v25  ;;  %v1671_v33 = vpack.c.bf16 %v64_v32, %v62_v31  ;;  %v66_v56 = vld [vmem:[#allocation2 + $0x40] sm:$0xff]  ;;  %v1690_v57 = vpack.c.bf16 %v69_v55, %v67_v54  ;;  %v68_v58 = vld [vmem:[#allocation2 + $0x50] sm:$0xff]  ;;  %v75_v59 = vld [vmem:[%s1837_s0 + $0x8] sm:$0xff] }
  0x2d   :  { %173 = vmatprep.mubr.f32.mxu0 %v1560_v0  ;;  %v1648_v8 = vrot.slane %v77_v7, %v81_v6  ;;  %v1654_v14 = vrot.slane %v77_v7, %v85_v13  ;;  %1244 = vmatpush1.bf16.msra.mxu1 %v1664_v29  ;;  %v71_v60 = vld [vmem:[#allocation2 + $0x68] sm:$0xff]  ;;  %v1695_v61 = vpack.c.bf16 %v68_v58, %v66_v56  ;;  %v73_v62 = vld [vmem:[#allocation2 + $0x78] sm:$0xff]  ;;  %v70_v63 = vld [vmem:[#allocation2 + $0x60] sm:$0xff] }
  0x2e   :  { %1252 = vmatpush1.bf16.msra.mxu0 %v1664_v29  ;;  %1246 = vmatprep.subr.bf16.mxu1 %v1666_v30  ;;  %v72_v1 = vld [vmem:[#allocation2 + $0x70] sm:$0xff]  ;;  %v1699_v2 = vpack.c.bf16 %v73_v62, %v71_v60 }
  0x2f   :  { %1254 = vmatprep.subr.bf16.mxu0 %v1666_v30  ;;  %v1703_v3 = vpack.c.bf16 %v72_v1, %v70_v63 }
  0x30   :  { %1168 = vmatmul.mubr.msk.f32.gmra.mrb[2].mxu0 %vm91_vm1, %v75_v59 }
  0x31   :  { %1248 = vmatpush1.bf16.msra.mxu1 %v1671_v33  ;;  %384 = vmatprep.mubr.f32.mxu0 %v1560_v0 }
  0x32   :  { %1256 = vmatpush1.bf16.msra.mxu0 %v1671_v33  ;;  %1266 = vmatprep.subr.bf16.mxu1 %v1662_v25 }
  0x33   :  { %1258 = vmatprep.subr.bf16.mxu0 %v1690_v57 }
  0x36   :  { %1260 = vmatpush1.bf16.msra.mxu0 %v1695_v61 }
  0x37   :  { %1262 = vmatprep.subr.bf16.mxu0 %v1699_v2 }
  0x3a   :  { %1264 = vmatpush1.bf16.msra.mxu0 %v1703_v3 }
  0x3b   :  { %1282 = vmatprep.subr.bf16.mxu0 %v1662_v25 }
  0xff   :  { %v169_v9 = vpop.f32.mrb[0].mxu0 }
 0x100   :  { %v1651_v10 = vadd.f32 %v169_v9, %v1648_v8  ;;  %v171_v11 = vpop.f32.mrb[1].mxu0 }
 0x101   :  { %v1657_v15 = vadd.f32 %v171_v11, %v1654_v14 }
 0x102   :  { %v1169_v12 = vmul.f32 -1.442695, %v1651_v10  ;;  %v207_v42 = vrot.slane %v1651_v10, 2 }
 0x103   :  { %v1170_v35 = vmul.f32 -1.442695, %v1657_v15  ;;  %v208_v44 = vrot.slane %v1657_v15, 2  ;;  %v314_v23 = vrot.slane %v1657_v15, 4 }
 0x104   :  { %1376 = vpow2.f32 %v1169_v12 }
 0x105   :  { %1378 = vtanh.f32 %v1657_v15 }
 0x10e   :  { %v1377_v16 = vpop.eup %1376 }
 0x10f   :  { %v183_v17 = vadd.f32 1.0, %v1377_v16  ;;  %v1379_v18 = vpop.eup %1378 }
 0x111   :  { %1380 = vrcp.f32 %v183_v17 }
 0x11b   :  { %v1381_v19 = vpop.eup %1380 }
 0x11c   :  { %v187_v20 = vmul.f32 %v1381_v19, %v1379_v18  ;;  %v1714_v18 = vpop.f32.mrb[2].mxu0 }
 0x11d   :  { %v1716_v19 = vpop.f32.mrb[3].mxu0 }
 0x11e   :  { %v201_v21 = vsel %vm200_vm2, %v187_v20, 0.0  ;;  %1382 = vtanh.f32 %v187_v20 }
 0x11f   :  { %298 = vrot.lane.b32.xlu1 %v201_v21, %s1561_s1  ;;  %1384 = vpow2.f32 %v1170_v35  ;;  %v313_v21 = vrot.slane %v1651_v10, 4 }
 0x128   :  { %v1383_v34 = vpop.eup %1382 }
 0x129   :  { %196 = vrot.lane.b32.xlu0 %v1383_v34, %s1561_s1  ;;  %v1385_v36 = vpop.eup %1384 }
 0x12a   :  { %v191_v37 = vadd.f32 1.0, %v1385_v36 }
 0x12c   :  { %1386 = vrcp.f32 %v191_v37 }
 0x136   :  { %v1387_v38 = vpop.eup %1386 }
 0x191   :  { %v299_v6 = vpop.permute.xlu1 %298 }
 0x19b   :  { %v197_v39 = vpop.permute.xlu0 %196 }
 0x19c   :  { %v199_v40 = vmul.f32 %v1387_v38, %v197_v39 }
 0x19e   :  { %203 = vrot.lane.b32.xlu0 %v199_v40, %s1561_s1 }
 0x210   :  { %v204_v41 = vpop.permute.xlu0 %203 }
 0x211   :  { %1171 = vmatmul.mubr.msk.f32.vlgmr.msra.gmra.mrb[0].mxu1 %vm200_vm2, %v204_v41 }
 0x212   :  { %1268 = vmatpush1.bf16.msra.mxu1 %v1664_v29  ;;  %486 = vmatprep.mubr.f32.mxu1 %v1560_v0 }
 0x213   :  { %1270 = vmatprep.subr.bf16.mxu1 %v1666_v30 }
 0x216   :  { %1272 = vmatpush1.bf16.msra.mxu1 %v1671_v33 }
 0x217   :  { %1274 = vmatprep.subr.bf16.mxu1 %v1690_v57 }
 0x21a   :  { %1276 = vmatpush1.bf16.msra.mxu1 %v1695_v61 }
 0x21b   :  { %1278 = vmatprep.subr.bf16.mxu1 %v1699_v2 }
 0x21e   :  { %1280 = vmatpush1.bf16.msra.mxu1 %v1703_v3 }
 0x21f   :  { %1298 = vmatprep.subr.bf16.mxu1 %v1662_v25 }
 0x2e4   :  { %v279_v43 = vpop.f32.mrb[0].mxu1 }
 0x2e5   :  { %v280_v45 = vadd.f32 %v279_v43, %v207_v42  ;;  %v281_v46 = vpop.f32.mrb[1].mxu1 }
 0x2e6   :  { %v282_v47 = vadd.f32 %v281_v46, %v208_v44 }
 0x2e7   :  { %v1172_v48 = vmul.f32 -1.442695, %v280_v45 }
 0x2e8   :  { %v1173_v4 = vmul.f32 -1.442695, %v282_v47 }
 0x2e9   :  { %1388 = vpow2.f32 %v1172_v48 }
 0x2ea   :  { %1390 = vtanh.f32 %v282_v47  ;;  %v416_v47 = vrot.slane %v1651_v10, 6 }
 0x2f3   :  { %v1389_v49 = vpop.eup %1388 }
 0x2f4   :  { %v287_v50 = vadd.f32 1.0, %v1389_v49  ;;  %v1391_v51 = vpop.eup %1390  ;;  %v417_v49 = vrot.slane %v1657_v15, 6 }
 0x2f6   :  { %1392 = vrcp.f32 %v287_v50 }
 0x2f7   :  { %1394 = vpow2.f32 %v1173_v4 }
 0x300   :  { %v1393_v52 = vpop.eup %1392 }
 0x301   :  { %v302_v53 = vmul.f32 %v1393_v52, %v1391_v51  ;;  %v1395_v5 = vpop.eup %1394  ;;  %v301_v9 = vmul.f32 %v1393_v52, %v299_v6 }
 0x302   :  { %v294_v7 = vadd.f32 1.0, %v1395_v5 }
 0x303   :  { %304 = vrot.lane.b32.xlu1 %v302_v53, %s1561_s1 }
 0x304   :  { %1396 = vrcp.f32 %v294_v7  ;;  %v1757_v7 = vadd.f32 %v1714_v18, %v1648_v8 }
 0x30e   :  { %v1397_v13 = vpop.eup %1396 }
 0x375   :  { %v305_v11 = vpop.permute.xlu1 %304 }
 0x376   :  { %v307_v12 = vadd.f32 %v305_v11, %v301_v9 }
 0x378   :  { %1398 = vtanh.f32 %v307_v12 }
 0x382   :  { %v1399_v16 = vpop.eup %1398 }
 0x383   :  { %v309_v17 = vmul.f32 %v1399_v16, %v1397_v13  ;;  %v1762_v16 = vadd.f32 %v1716_v19, %v1654_v14 }
 0x385   :  { %311 = vrot.lane.b32.xlu0 %v309_v17, %s1561_s1 }
 0x3f7   :  { %v312_v20 = vpop.permute.xlu0 %311 }
 0x3f8   :  { %1174 = vmatmul.mubr.msk.f32.vlgmr.msra.gmra.mrb[4].mxu0 %vm317_vm3, %v312_v20 }
 0x3f9   :  { %1284 = vmatpush1.bf16.msra.mxu0 %v1664_v29  ;;  %584 = vmatprep.mubr.f32.mxu0 %v1560_v0 }
 0x3fa   :  { %1286 = vmatprep.subr.bf16.mxu0 %v1666_v30 }
 0x3fd   :  { %1288 = vmatpush1.bf16.msra.mxu0 %v1671_v33 }
 0x3fe   :  { %1290 = vmatprep.subr.bf16.mxu0 %v1690_v57 }
 0x401   :  { %1292 = vmatpush1.bf16.msra.mxu0 %v1695_v61 }
 0x402   :  { %1294 = vmatprep.subr.bf16.mxu0 %v1699_v2 }
 0x405   :  { %1296 = vmatpush1.bf16.msra.mxu0 %v1703_v3 }
 0x406   :  { %1314 = vmatprep.subr.bf16.mxu0 %v1662_v25 }
 0x4cb   :  { %v386_v22 = vpop.f32.mrb[4].mxu0 }
 0x4cc   :  { %v387_v24 = vadd.f32 %v386_v22, %v313_v21  ;;  %v388_v26 = vpop.f32.mrb[5].mxu0 }
 0x4cd   :  { %v389_v27 = vadd.f32 %v388_v26, %v314_v23 }
 0x4ce   :  { %v1175_v28 = vmul.f32 -1.442695, %v387_v24 }
 0x4cf   :  { %v1176_v37 = vmul.f32 -1.442695, %v389_v27 }
 0x4d0   :  { %1400 = vpow2.f32 %v1175_v28 }
 0x4d1   :  { %1402 = vtanh.f32 %v389_v27 }
 0x4da   :  { %v1401_v31 = vpop.eup %1400 }
 0x4db   :  { %v394_v32 = vadd.f32 1.0, %v1401_v31  ;;  %v1403_v34 = vpop.eup %1402 }
 0x4dd   :  { %1404 = vrcp.f32 %v394_v32 }
 0x4de   :  { %1406 = vpow2.f32 %v1176_v37 }
 0x4e7   :  { %v1405_v35 = vpop.eup %1404 }
 0x4e8   :  { %v405_v36 = vmul.f32 %v1405_v35, %v1403_v34  ;;  %v1407_v38 = vpop.eup %1406  ;;  %v404_v40 = vmul.f32 %v1405_v35, %v307_v12  ;;  %v618_v35 = vrot.slane %v1757_v7, 2 }
 0x4e9   :  { %v401_v39 = vadd.f32 1.0, %v1407_v38 }
 0x4ea   :  { %407 = vrot.lane.b32.xlu1 %v405_v36, %s1561_s1 }
 0x4eb   :  { %1408 = vrcp.f32 %v401_v39  ;;  %v619_v39 = vrot.slane %v1762_v16, 2 }
 0x4f5   :  { %v1409_v43 = vpop.eup %1408 }
 0x55c   :  { %v408_v41 = vpop.permute.xlu1 %407 }
 0x55d   :  { %v410_v42 = vadd.f32 %v408_v41, %v404_v40 }
 0x55f   :  { %1410 = vtanh.f32 %v410_v42 }
 0x569   :  { %v1411_v44 = vpop.eup %1410 }
 0x56a   :  { %v412_v45 = vmul.f32 %v1411_v44, %v1409_v43 }
 0x56c   :  { %414 = vrot.lane.b32.xlu0 %v412_v45, %s1561_s1 }
 0x5de   :  { %v415_v46 = vpop.permute.xlu0 %414 }
 0x5df   :  { %1177 = vmatmul.mubr.msk.f32.vlgmr.msra.gmra.mrb[2].mxu1 %vm317_vm3, %v415_v46 }
 0x5e0   :  { %1300 = vmatpush1.bf16.msra.mxu1 %v1664_v29  ;;  %688 = vmatprep.mubr.f32.mxu1 %v1560_v0 }
 0x5e1   :  { %1302 = vmatprep.subr.bf16.mxu1 %v1666_v30 }
 0x5e4   :  { %1304 = vmatpush1.bf16.msra.mxu1 %v1671_v33 }
 0x5e5   :  { %1306 = vmatprep.subr.bf16.mxu1 %v1690_v57 }
 0x5e8   :  { %1308 = vmatpush1.bf16.msra.mxu1 %v1695_v61 }
 0x5e9   :  { %1310 = vmatprep.subr.bf16.mxu1 %v1699_v2 }
 0x5ec   :  { %1312 = vmatpush1.bf16.msra.mxu1 %v1703_v3 }
 0x5ed   :  { %1330 = vmatprep.subr.bf16.mxu1 %v1662_v25 }
 0x6b2   :  { %v488_v48 = vpop.f32.mrb[2].mxu1 }
 0x6b3   :  { %v489_v50 = vadd.f32 %v488_v48, %v416_v47  ;;  %v490_v51 = vpop.f32.mrb[3].mxu1 }
 0x6b4   :  { %v491_v52 = vadd.f32 %v490_v51, %v417_v49 }
 0x6b5   :  { %v1178_v53 = vmul.f32 -1.442695, %v489_v50  ;;  %v720_v50 = vrot.slane %v1757_v7, 4 }
 0x6b6   :  { %v1179_v25 = vmul.f32 -1.442695, %v491_v52 }
 0x6b7   :  { %1412 = vpow2.f32 %v1178_v53 }
 0x6b8   :  { %1414 = vtanh.f32 %v491_v52 }
 0x6c1   :  { %v1413_v54 = vpop.eup %1412 }
 0x6c2   :  { %v496_v55 = vadd.f32 1.0, %v1413_v54  ;;  %v1415_v56 = vpop.eup %1414 }
 0x6c4   :  { %1416 = vrcp.f32 %v496_v55  ;;  %v721_v55 = vrot.slane %v1762_v16, 4 }
 0x6c5   :  { %1418 = vpow2.f32 %v1179_v25 }
 0x6ce   :  { %v1417_v58 = vpop.eup %1416 }
 0x6cf   :  { %v507_v59 = vmul.f32 %v1417_v58, %v1415_v56  ;;  %v1419_v10 = vpop.eup %1418  ;;  %v506_v62 = vmul.f32 %v1417_v58, %v410_v42 }
 0x6d0   :  { %v503_v60 = vadd.f32 1.0, %v1419_v10 }
 0x6d1   :  { %509 = vrot.lane.b32.xlu1 %v507_v59, %s1561_s1 }
 0x6d2   :  { %1420 = vrcp.f32 %v503_v60 }
 0x6dc   :  { %v1421_v1 = vpop.eup %1420 }
 0x743   :  { %v510_v15 = vpop.permute.xlu1 %509 }
 0x744   :  { %v512_v63 = vadd.f32 %v510_v15, %v506_v62 }
 0x746   :  { %1422 = vtanh.f32 %v512_v63 }
 0x750   :  { %v1423_v4 = vpop.eup %1422 }
 0x751   :  { %v514_v5 = vmul.f32 %v1423_v4, %v1421_v1 }
 0x753   :  { %516 = vrot.lane.b32.xlu0 %v514_v5, %s1561_s1 }
 0x7c5   :  { %v517_v6 = vpop.permute.xlu0 %516 }
 0x7c6   :  { %1180 = vmatmul.mubr.msk.f32.vlgmr.msra.gmra.mrb[6].mxu0 %vm317_vm3, %v517_v6 }
 0x7c7   :  { %1316 = vmatpush1.bf16.msra.mxu0 %v1664_v29  ;;  %790 = vmatprep.mubr.f32.mxu0 %v1560_v0 }
 0x7c8   :  { %1318 = vmatprep.subr.bf16.mxu0 %v1666_v30 }
 0x7cb   :  { %1320 = vmatpush1.bf16.msra.mxu0 %v1671_v33 }
 0x7cc   :  { %1322 = vmatprep.subr.bf16.mxu0 %v1690_v57 }
 0x7cf   :  { %1324 = vmatpush1.bf16.msra.mxu0 %v1695_v61 }
 0x7d0   :  { %1326 = vmatprep.subr.bf16.mxu0 %v1699_v2 }
 0x7d3   :  { %1328 = vmatpush1.bf16.msra.mxu0 %v1703_v3 }
 0x899   :  { %v586_v9 = vpop.f32.mrb[6].mxu0 }
 0x89a   :  { %v587_v11 = vadd.f32 %v586_v9, %v1757_v7  ;;  %v588_v12 = vpop.f32.mrb[7].mxu0 }
 0x89b   :  { %v589_v17 = vadd.f32 %v588_v12, %v1762_v16 }
 0x89c   :  { %v1181_v13 = vmul.f32 -1.442695, %v587_v11 }
 0x89d   :  { %v1182_v18 = vmul.f32 -1.442695, %v589_v17 }
 0x89e   :  { %1424 = vpow2.f32 %v1181_v13  ;;  %v822_v13 = vrot.slane %v1757_v7, 6  ;;  %v923_v7 = vld [vmem:[#allocation5 + $0x10] sm:$0xff] }
 0x89f   :  { %1426 = vtanh.f32 %v589_v17 }
 0x8a8   :  { %v1425_v20 = vpop.eup %1424 }
 0x8a9   :  { %v594_v21 = vadd.f32 1.0, %v1425_v20  ;;  %v1427_v22 = vpop.eup %1426 }
 0x8ab   :  { %1428 = vrcp.f32 %v594_v21 }
 0x8ac   :  { %1430 = vpow2.f32 %v1182_v18 }
 0x8b5   :  { %v1429_v23 = vpop.eup %1428 }
 0x8b6   :  { %v605_v8 = vmul.f32 %v1429_v23, %v1427_v22  ;;  %v1431_v24 = vpop.eup %1430  ;;  %v604_v27 = vmul.f32 %v1429_v23, %v512_v63  ;;  %v823_v23 = vrot.slane %v1762_v16, 6 }
 0x8b7   :  { %v601_v26 = vadd.f32 1.0, %v1431_v24 }
 0x8b8   :  { %607 = vrot.lane.b32.xlu1 %v605_v8, %s1561_s1 }
 0x8b9   :  { %1432 = vrcp.f32 %v601_v26 }
 0x8c3   :  { %v1433_v14 = vpop.eup %1432 }
 0x92a   :  { %v608_v28 = vpop.permute.xlu1 %607 }
 0x92b   :  { %v610_v31 = vadd.f32 %v608_v28, %v604_v27 }
 0x92d   :  { %1434 = vtanh.f32 %v610_v31 }
 0x937   :  { %v1435_v19 = vpop.eup %1434 }
 0x938   :  { %v612_v32 = vmul.f32 %v1435_v19, %v1433_v14  ;;  %v922_v14 = vld [vmem:[#allocation5 + $0x8] sm:$0xff]  ;;  %v1562_v19 = vmov 0.0|0.0  }
 0x939   :  { %1345 = vmatprep.subr.bf16.mxu0 %v1562_v19 }
 0x93a   :  { %614 = vrot.lane.b32.xlu0 %v612_v32, %s1561_s1 }
 0x9ac   :  { %v615_v34 = vpop.permute.xlu0 %614 }
 0x9ad   :  { %1183 = vmatmul.mubr.msk.f32.vlgmr.msra.gmra.mrb[4].mxu1 %vm317_vm3, %v615_v34  ;;  %v924_v34 = vld [vmem:[#allocation5 + $0x18] sm:$0xff] }
 0x9ae   :  { %1332 = vmatpush1.bf16.msra.mxu1 %v1664_v29  ;;  %892 = vmatprep.mubr.f32.mxu1 %v1560_v0  ;;  %v1349_v16 = vpack.c.bf16 %v924_v34, %v923_v7 }
 0x9af   :  { %1334 = vmatprep.subr.bf16.mxu1 %v1666_v30 }
 0x9b2   :  { %1336 = vmatpush1.bf16.msra.mxu1 %v1671_v33 }
 0x9b3   :  { %1338 = vmatprep.subr.bf16.mxu1 %v1690_v57 }
 0x9b6   :  { %1340 = vmatpush1.bf16.msra.mxu1 %v1695_v61 }
 0x9b7   :  { %1342 = vmatprep.subr.bf16.mxu1 %v1699_v2 }
 0x9ba   :  { %1344 = vmatpush1.bf16.msra.mxu1 %v1703_v3 }
 0x9bb   :  { %1357 = vmatprep.subr.bf16.mxu1 %v1562_v19 }
 0xa80   :  { %v690_v36 = vpop.f32.mrb[4].mxu1 }
 0xa81   :  { %v691_v37 = vadd.f32 %v690_v36, %v618_v35  ;;  %v692_v38 = vpop.f32.mrb[5].mxu1  ;;  %v925_v35 = vld [vmem:[#allocation5 + $0x20] sm:$0xff]  ;;  %v926_v36 = vld [vmem:[#allocation5 + $0x28] sm:$0xff] }
 0xa82   :  { %v693_v30 = vadd.f32 %v692_v38, %v619_v39  ;;  %v927_v38 = vld [vmem:[#allocation5 + $0x30] sm:$0xff] }
 0xa83   :  { %v1184_v29 = vmul.f32 -1.442695, %v691_v37  ;;  %v1352_v37 = vpack.c.bf16 %v926_v36, %v925_v35 }
 0xa84   :  { %v1185_v2 = vmul.f32 -1.442695, %v693_v30 }
 0xa85   :  { %1436 = vpow2.f32 %v1184_v29  ;;  %v928_v29 = vld [vmem:[#allocation5 + $0x38] sm:$0xff] }
 0xa86   :  { %1438 = vtanh.f32 %v693_v30  ;;  %v1355_v39 = vpack.c.bf16 %v928_v29, %v927_v38 }
 0xa8f   :  { %v1437_v40 = vpop.eup %1436 }
 0xa90   :  { %v698_v33 = vadd.f32 1.0, %v1437_v40  ;;  %v1439_v57 = vpop.eup %1438 }
 0xa92   :  { %1440 = vrcp.f32 %v698_v33 }
 0xa93   :  { %1442 = vpow2.f32 %v1185_v2 }
 0xa9c   :  { %v1441_v61 = vpop.eup %1440 }
 0xa9d   :  { %v709_v41 = vmul.f32 %v1441_v61, %v1439_v57  ;;  %v1443_v3 = vpop.eup %1442  ;;  %v708_v43 = vmul.f32 %v1441_v61, %v610_v31  ;;  %v921_v31 = vld [vmem:[#allocation5] sm:$0xff] }
 0xa9e   :  { %v705_v42 = vadd.f32 1.0, %v1443_v3  ;;  %v1346_v32 = vpack.c.bf16 %v922_v14, %v921_v31 }
 0xa9f   :  { %711 = vrot.lane.b32.xlu1 %v709_v41, %s1561_s1 }
 0xaa0   :  { %1444 = vrcp.f32 %v705_v42 }
 0xaaa   :  { %v1445_v46 = vpop.eup %1444 }
 0xb11   :  { %v712_v44 = vpop.permute.xlu1 %711 }
 0xb12   :  { %v714_v45 = vadd.f32 %v712_v44, %v708_v43  ;;  %v1192_v43 = vld [vmem:[%s1842_s5] ss:$0 sm:$0xff] }
 0xb14   :  { %1446 = vtanh.f32 %v714_v45 }
 0xb1e   :  { %v1447_v47 = vpop.eup %1446 }
 0xb1f   :  { %v716_v48 = vmul.f32 %v1447_v47, %v1445_v46 }
 0xb21   :  { %718 = vrot.lane.b32.xlu0 %v716_v48, %s1561_s1 }
 0xb93   :  { %v719_v49 = vpop.permute.xlu0 %718 }
 0xb94   :  { %1186 = vmatmul.mubr.msk.f32.vlgmr.msra.gmra.mrb[8].mxu0 %vm317_vm3, %v719_v49 }
 0xb95   :  { %1227 = vmatprep.mubr.msk.f32.mxu0 %vm1563_vm4, %v1560_v0  ;;  %1347 = vmatpush3.bf16.msra.mxu0 %v1346_v32 }
 0xb96   :  { %1348 = vmatprep.subr.bf16.mxu0 %v1562_v19 }
 0xb99   :  { %1350 = vmatpush3.bf16.msra.mxu0 %v1349_v16 }
 0xb9a   :  { %1351 = vmatprep.subr.bf16.mxu0 %v1562_v19 }
 0xb9d   :  { %1353 = vmatpush3.bf16.msra.mxu0 %v1352_v37 }
 0xb9e   :  { %1354 = vmatprep.subr.bf16.mxu0 %v1562_v19 }
 0xba1   :  { %1356 = vmatpush3.bf16.msra.mxu0 %v1355_v39 }
 0xc67   :  { %v792_v51 = vpop.f32.mrb[8].mxu0 }
 0xc68   :  { %v793_v52 = vadd.f32 %v792_v51, %v720_v50  ;;  %v794_v53 = vpop.f32.mrb[9].mxu0 }
 0xc69   :  { %v795_v56 = vadd.f32 %v794_v53, %v721_v55 }
 0xc6a   :  { %v1187_v54 = vmul.f32 -1.442695, %v793_v52 }
 0xc6b   :  { %v1188_v62 = vmul.f32 -1.442695, %v795_v56 }
 0xc6c   :  { %1448 = vpow2.f32 %v1187_v54 }
 0xc6d   :  { %1450 = vtanh.f32 %v795_v56 }
 0xc76   :  { %v1449_v58 = vpop.eup %1448 }
 0xc77   :  { %v800_v59 = vadd.f32 1.0, %v1449_v58  ;;  %v1451_v25 = vpop.eup %1450 }
 0xc79   :  { %1452 = vrcp.f32 %v800_v59 }
 0xc7a   :  { %1454 = vpow2.f32 %v1188_v62 }
 0xc83   :  { %v1453_v10 = vpop.eup %1452 }
 0xc84   :  { %v811_v60 = vmul.f32 %v1453_v10, %v1451_v25  ;;  %v1455_v15 = vpop.eup %1454  ;;  %v810_v1 = vmul.f32 %v1453_v10, %v714_v45 }
 0xc85   :  { %v807_v63 = vadd.f32 1.0, %v1455_v15 }
 0xc86   :  { %813 = vrot.lane.b32.xlu1 %v811_v60, %s1561_s1 }
 0xc87   :  { %1456 = vrcp.f32 %v807_v63 }
 0xc91   :  { %v1457_v6 = vpop.eup %1456 }
 0xcf8   :  { %v814_v4 = vpop.permute.xlu1 %813 }
 0xcf9   :  { %v816_v5 = vadd.f32 %v814_v4, %v810_v1 }
 0xcfb   :  { %1458 = vtanh.f32 %v816_v5 }
 0xd05   :  { %v1459_v9 = vpop.eup %1458 }
 0xd06   :  { %v818_v11 = vmul.f32 %v1459_v9, %v1457_v6  ;;  %v1062_v9 = vld [vmem:[%s1843_s6] sm:$0xff] }
 0xd08   :  { %820 = vrot.lane.b32.xlu0 %v818_v11, %s1561_s1  ;;  %v1063_v11 = vld [vmem:[%s1843_s6 + $0x8] sm:$0xff] }
 0xd7a   :  { %v821_v12 = vpop.permute.xlu0 %820 }
 0xd7b   :  { %1189 = vmatmul.mubr.msk.f32.vlgmr.msra.gmra.mrb[6].mxu1 %vm317_vm3, %v821_v12  ;;  %v1064_v12 = vld [vmem:[%s1843_s6 + $0x10] sm:$0xff] }
 0xd7c   :  { %1238 = vmatprep.mubr.msk.f32.mxu1 %vm1563_vm4, %v1560_v0 }
 0xe4e   :  { %v894_v17 = vpop.f32.mrb[6].mxu1 }
 0xe4f   :  { %v895_v20 = vadd.f32 %v894_v17, %v822_v13  ;;  %v896_v21 = vpop.f32.mrb[7].mxu1  ;;  %v1358_v13 = vpack.c.bf16 %v1063_v11, %v1062_v9  ;;  %v1065_v17 = vld [vmem:[%s1843_s6 + $0x18] sm:$0xff]  ;;  %s1565_s6 = smov [#allocation7]  }
 0xe50   :  { %v897_v8 = vadd.f32 %v896_v21, %v823_v23  ;;  %s1155_s27 = sshll.u32 %s1565_s6, 4  ;;  %s1156_s27 = int_to_ptr.vmem [resolvable:$true] %s1155_s27 }
 0xe51   :  { %v1190_v22 = vmul.f32 -1.442695, %v895_v20  ;;  %1359 = vmatpush3.bf16.msra.mxu1 %v1358_v13  ;;  %v1361_v20 = vpack.c.bf16 %v1065_v17, %v1064_v12  ;;  %s1526_s29 = scalar_lea.vmem %s1156_s27, 32  ;;  %p1531_p3 = scmp.lt.s32.totalorder %s1156_s27, %s1156_s27 }
 0xe52   :  { %v1191_v30 = vmul.f32 -1.442695, %v897_v8  ;;  %1360 = vmatprep.subr.bf16.mxu1 %v1562_v19  ;;  %p1527_p2 = scmp.ne.s32.totalorder %s1156_s27, %s1526_s29  ;;  %p1532_p4 = scmp.lt.s32.totalorder %s1526_s29, %s1526_s29 }
 0xe53   :  { %1460 = vpow2.f32 %v1190_v22 }
 0xe54   :  { %1462 = vtanh.f32 %v897_v8  ;;  %p1533_p5 = por %p1532_p4, %p1531_p3 }
 0xe55   :  { %1362 = vmatpush3.bf16.msra.mxu1 %v1361_v20 }
 0xe56   :  { %p1534_p6 = pnand %p1533_p5, %p1527_p2 }
 0xe5d   :  { %v1461_v18 = vpop.eup %1460 }
 0xe5e   :  { %v902_v24 = vadd.f32 1.0, %v1461_v18  ;;  %v1463_v26 = vpop.eup %1462 }
 0xe60   :  { %1464 = vrcp.f32 %v902_v24 }
 0xe61   :  { %1466 = vpow2.f32 %v1191_v30 }
 0xe6a   :  { %v1465_v27 = vpop.eup %1464 }
 0xe6b   :  { %v913_v28 = vmul.f32 %v1465_v27, %v1463_v26  ;;  %v1467_v0 = vpop.eup %1466  ;;  %v912_v33 = vmul.f32 %v1465_v27, %v816_v5  ;;  %v1195_v26 = vld [vmem:[%s1844_s7] ss:$0 sm:$0xff] }
 0xe6c   :  { %v909_v40 = vadd.f32 1.0, %v1467_v0 }
 0xe6d   :  { %915 = vrot.lane.b32.xlu1 %v913_v28, %s1561_s1 }
 0xe6e   :  { %1468 = vrcp.f32 %v909_v40 }
 0xe78   :  { %v1469_v41 = vpop.eup %1468 }
 0xedf   :  { %v916_v57 = vpop.permute.xlu1 %915 }
 0xee0   :  { %v918_v61 = vadd.f32 %v916_v57, %v912_v33 }
 0xee2   :  { %1470 = vtanh.f32 %v918_v61 }
 0xeec   :  { %v1471_v2 = vpop.eup %1470 }
 0xeed   :  { %v920_v3 = vmul.f32 %v1471_v2, %v1469_v41 }
 0xeef   :  { %937 = vrot.lane.b32.xlu0 %v920_v3, %s1561_s1 }
 0xef3   :  { %1019 = vrot.lane.b32.xlu0 %v918_v61, %s1561_s1 }
 0xf61   :  { %v938_v42 = vpop.permute.xlu0 %937 }
 0xf62   :  { %1228 = vmatmul.mubr.msk.f32.vlgmr.msra.gmra.mrb[10].mxu0 %vm317_vm3, %v938_v42 }
 0xf65   :  { %v1020_v54 = vpop.permute.xlu0 %1019 }
0x1035   :  { %v1007_v44 = vpop.f32.mrb[10].mxu0 }
0x1036   :  { %v1008_v45 = vadd.f32 %v1192_v43, %v1007_v44  ;;  %v1229_v46 = vpop.f32.mrb[11].mxu0 }
0x1038   :  { %1472 = vtanh.f32 %v1008_v45  ;;  %v1194_v48 = vmul.f32 -1.442695, %v1008_v45 }
0x103a   :  { %1474 = vpow2.f32 %v1194_v48 }
0x1042   :  { %v1473_v47 = vpop.eup %1472 }
0x1043   :  { %1024 = vrot.lane.b32.xlu1 %v1473_v47, %s1561_s1 }
0x1044   :  { %v1475_v49 = vpop.eup %1474 }
0x1045   :  { %v1014_v50 = vadd.f32 1.0, %v1475_v49 }
0x1047   :  { %1476 = vrcp.f32 %v1014_v50 }
0x1051   :  { %v1477_v51 = vpop.eup %1476 }
0x1052   :  { %v1022_v55 = vmul.f32 %v1477_v51, %v1020_v54 }
0x10b5   :  { %v1025_v52 = vpop.permute.xlu1 %1024 }
0x10b6   :  { %v1027_v53 = vmul.f32 %v1477_v51, %v1025_v52 }
0x10b8   :  { %1029 = vrot.lane.b32.xlu1 %v1027_v53, %s1564_s17 }
0x112a   :  { %v1030_v56 = vpop.permute.xlu1 %1029 }
0x112b   :  { %v1032_v58 = vadd.f32 %v1030_v56, %v1022_v55 }
0x112d   :  { %1478 = vtanh.f32 %v1032_v58 }
0x1137   :  { %v1479_v59 = vpop.eup %1478 }
0x1138   :  { %1035 = vrot.lane.b32.xlu0 %v1479_v59, %s1561_s1 }
0x11aa   :  { %v1036_v25 = vpop.permute.xlu0 %1035 }
0x11ab   :  { %v1038_v10 = vmul.f32 %v1477_v51, %v1036_v25 }
0x11ad   :  { %1040 = vrot.lane.b32.xlu1 %v1038_v10, %s1564_s17 }
0x121f   :  { %v1041_v60 = vpop.permute.xlu1 %1040 }
0x1220   :  { %v1044_v62 = vsel %vm1043_vm5, %v1041_v60, 0.0 }
0x1221   :  { %1045 = vadd.xlane.f32.xlu0 %v1044_v62 }
0x12ae   :  { %v1046_v15 = vpop.xlane.xlu0 %1045 }
0x12af   :  { %v1048_v63 = vmul.f32 0.03125, %v1046_v15 }
0x12b1   :  { %v1049_v1 = vsub.f32 %v1038_v10, %v1048_v63 }
0x12b3   :  { %v1050_v4 = vmul.f32 %v1049_v1, %v1049_v1 }
0x12b5   :  { %1052 = vrot.lane.b32.xlu1 %v1050_v4, %s1564_s17 }
0x1327   :  { %v1053_v5 = vpop.permute.xlu1 %1052 }
0x1328   :  { %v1055_v6 = vsel %vm1043_vm5, %v1053_v5, 0.0 }
0x1329   :  { %1056 = vadd.xlane.f32.xlu1 %v1055_v6 }
0x13b6   :  { %v1057_v21 = vpop.xlane.xlu1 %1056 }
0x13b7   :  { %v1058_v22 = vmul.f32 0.03125, %v1057_v21 }
0x13b9   :  { %v1059_v23 = vadd.f32 1e-05, %v1058_v22 }
0x13bb   :  { %1480 = vrsqrt.f32 %v1059_v23 }
0x13c5   :  { %v1481_v8 = vpop.eup %1480 }
0x13c6   :  { %v1061_v18 = vmul.f32 %v1481_v8, %v1049_v1 }
0x13c8   :  { %1074 = vrot.lane.b32.xlu0 %v1061_v18, %s1564_s17 }
0x143a   :  { %v1075_v24 = vpop.permute.xlu0 %1074 }
0x143b   :  { %1239 = vmatmul.mubr.msk.f32.vlgmr.msra.gmra.mrb[8].mxu1 %vm200_vm2, %v1075_v24 }
0x150e   :  { %v1144_v27 = vpop.f32.mrb[8].mxu1 }
0x150f   :  { %v1145_v28 = vadd.f32 %v1195_v26, %v1144_v27  ;;  %v1240_v31 = vpop.f32.mrb[9].mxu1 }
0x1511   :  { %1148 = vst [vmem:[#allocation7] sm:$0x3] %v1145_v28 }
0x1512   :  { %1537 = shalt.err (!%p1534_p6)
}
0x1513   :  { %s1538_s30 = scalar_lea.hbm %s1845_s8, 32 }
0x1514   :  { %p1539_p7 = scmp.ne.s32.totalorder %s1845_s8, %s1538_s30  ;;  %p1542_p8 = scmp.lt.u32.totalorder %s1538_s30, %s1845_s8 }
0x1516   :  { %p1544_p9 = pnand %p1542_p8, %p1539_p7 }
0x1518   :  { %1547 = shalt.err (!%p1544_p9)
}
0x1519   :  { %1158 = dma.vmem_to_hbm [thread:$0]  %s1156_s27, 32, %s1845_s8, [#allocation4]  }
0x151a   :  { %1552 = dma.done.wait [#allocation4], 32  }
0x151b   :  { %1553 = vsyncadd [#allocation4], 4294967264 }
0x151c   :  { %1162 = vsyncpa [#allocation3], 1 }
0x151d   :  { %1163 = vsyncpa [#allocation6], 1 }
0x151e   :  { %1164 = vsyncpa [#allocation4], 1 }

</bundles_post_ra>
